<compile_context>
chip_gen: v5e
topology: v5e:2x2
jax: 0.10.0
libtpu: 0.0.40
codegen_flags: <defaults>
</compile_context>

<pallas_src>
import jax
import jax.numpy as jnp
from jax.experimental import pallas as pl
from jax.experimental.pallas import tpu as pltpu


# ----------------------------------------------------------------------------
# Generation-aware VMEM budgets
# ----------------------------------------------------------------------------
def _tpu_vmem_capacity_bytes():
    try:
        cap = getattr(pltpu.get_tpu_info(), "vmem_capacity_bytes", None)
        if cap:
            return int(cap)
    except Exception:
        pass
    return 64 * 1024 * 1024  # conservative fallback (v7x per-TC VMEM)


_VMEM_CAP = _tpu_vmem_capacity_bytes()
# Scoped compiler limit: ~75% of physical (=> ~96 MiB on v5e/v6e, ~48 MiB on v7x).
_VMEM_LIMIT = min(int(_VMEM_CAP * 0.75), 96 * 1024 * 1024)
# Budget for the pipelined data tiles (headroom left for weights / scratch /
# compiler-internal scratch on top of this).
_TILE_BUDGET = int(_VMEM_CAP * 0.40)


def _pick_seq_tile(seq_len, bytes_per_token, budget_bytes):
    """Largest sequence tile (multiple of 128, else of 8, that divides seq_len)
    whose double-buffered streams fit the VMEM budget; full seq_len if small."""
    cap_rows = max(8, budget_bytes // max(2 * bytes_per_token, 1))  # 2x: double-buffer
    if seq_len <= cap_rows:
        return seq_len
    t = (min(cap_rows, seq_len) // 128) * 128
    while t >= 128:
        if seq_len % t == 0:
            return t
        t -= 128
    t = (min(cap_rows, seq_len) // 8) * 8
    while t >= 8:
        if seq_len % t == 0:
            return t
        t -= 8
    # TODO(synk): masked-tail handling for long sequences with no aligned divisor.
    return seq_len


# ----------------------------------------------------------------------------
# Kernels
# ----------------------------------------------------------------------------
def _linear_kernel(x_ref, w_ref, b_ref, o_ref):
    # x: [TL, K] f32, w: [K, N] bf16 (pre-cast once in wrapper), b: [1, N] f32.
    o_ref[...] = (
        jnp.dot(x_ref[...].astype(jnp.bfloat16), w_ref[...],
                preferred_element_type=jnp.float32)
        + b_ref[...]
    )


def _encoder_layer_export_kernel(x_ref, w1_ref, b1_ref, w2_ref, b2_ref, f2_ref, h_ref):
    # Teacher / debug path: fc1 + ReLU + fc2 + residual, exports fc2_output.
    x = x_ref[...]                                                      # [TL, D] f32
    f1 = jnp.maximum(
        jnp.dot(x.astype(jnp.bfloat16), w1_ref[...],
                preferred_element_type=jnp.float32) + b1_ref[...], 0.0)
    f2 = jnp.dot(f1.astype(jnp.bfloat16), w2_ref[...],
                 preferred_element_type=jnp.float32) + b2_ref[...]
    f2_ref[...] = f2
    h_ref[...] = x + f2


def _encoder_layer_plain_kernel(x_ref, w1_ref, b1_ref, w2_ref, b2_ref, h_ref):
    # Unsupervised student layer: fc2 output never leaves VMEM.
    x = x_ref[...]
    f1 = jnp.maximum(
        jnp.dot(x.astype(jnp.bfloat16), w1_ref[...],
                preferred_element_type=jnp.float32) + b1_ref[...], 0.0)
    f2 = jnp.dot(f1.astype(jnp.bfloat16), w2_ref[...],
                 preferred_element_type=jnp.float32) + b2_ref[...]
    h_ref[...] = x + f2


def _make_encoder_layer_kd_kernel(n_pairs):
    """Supervised student layer: fc1+ReLU+fc2+residual with the masked-MSE KD
    terms (vs n_pairs teacher feature pairs) accumulated in VMEM scratch."""
    def kernel(*refs):
        x_ref, w1_ref, b1_ref, w2_ref, b2_ref = refs[:5]
        t_refs = refs[5:5 + 2 * n_pairs]               # (t_input, t_fc2) per src layer
        m_ref = refs[5 + 2 * n_pairs]                  # [TL, 1] mask
        h_ref = refs[5 + 2 * n_pairs + 1]
        loss_ref = refs[5 + 2 * n_pairs + 2]           # [1, 1] per-example numerator
        num_sc = refs[5 + 2 * n_pairs + 3]             # VMEM scratch [1, 1]

        li = pl.program_id(1)

        @pl.when(li == 0)
        def _init():
            num_sc[...] = jnp.zeros_like(num_sc)

        x = x_ref[...]                                                  # [TL, D] f32
        f1 = jnp.maximum(
            jnp.dot(x.astype(jnp.bfloat16), w1_ref[...],
                    preferred_element_type=jnp.float32) + b1_ref[...], 0.0)
        f2 = jnp.dot(f1.astype(jnp.bfloat16), w2_ref[...],
                     preferred_element_type=jnp.float32) + b2_ref[...]
        h_ref[...] = x + f2                                             # residual

        # Masked MSE fused here: student features never round-trip HBM.
        m = m_ref[...]                                                  # [TL, 1] f32
        per_tok = jnp.zeros_like(m)
        for p in range(n_pairs):                                        # static unroll
            d_in = t_refs[2 * p][...] - x
            d_f2 = t_refs[2 * p + 1][...] - f2
            per_tok = per_tok + jnp.mean(d_in * d_in, axis=-1, keepdims=True)
            per_tok = per_tok + jnp.mean(d_f2 * d_f2, axis=-1, keepdims=True)
        num_sc[...] += jnp.sum(per_tok * m, axis=0, keepdims=True)      # [1, 1]

        @pl.when(li == pl.num_programs(1) - 1)
        def _finalize():
            loss_ref[...] = num_sc[...]

    return kernel


def _qe_head_kernel(h_ref, m_ref, w_ref, b_ref, o_ref, sum_sc, den_sc):
    # Fused masked mean-pool + Dout=1 head as VPU multiply + reduce, tiled over L.
    li = pl.program_id(0)

    @pl.when(li == 0)
    def _init():
        sum_sc[...] = jnp.zeros_like(sum_sc)
        den_sc[...] = jnp.zeros_like(den_sc)

    h = h_ref[...]                                          # [B, TL, D] f32
    m = m_ref[...]                                          # [B, TL] f32
    sum_sc[...] += jnp.sum(h * m[..., None], axis=1)        # [B, D]
    den_sc[...] += jnp.sum(m, axis=-1, keepdims=True)       # [B, 1]

    @pl.when(li == pl.num_programs(0) - 1)
    def _finalize():
        # NOTE: den==0 (fully masked example) yields NaN/Inf like the PyTorch ref.
        pooled = sum_sc[...] / den_sc[...]                  # [B, D]
        o_ref[...] = (jnp.sum(pooled * w_ref[...], axis=-1, keepdims=True)
                      + b_ref[...])                         # [B, 1]


# ----------------------------------------------------------------------------
# Wrappers
# ----------------------------------------------------------------------------
def _layer_specs(d, tl):
    x_spec = pl.BlockSpec((None, tl, d), lambda bi, li: (bi, li, 0))
    w_spec = pl.BlockSpec((d, d), lambda bi, li: (0, 0))
    b_spec = pl.BlockSpec((1, d), lambda bi, li: (0, 0))
    return x_spec, w_spec, b_spec


def pallas_linear(x, w, b):
    """y = x @ w + b over [B, L, K] inputs, gridded (batch, seq-tiles)."""
    bsz, seq, k = x.shape
    n = w.shape[1]
    wb = w.astype(jnp.bfloat16)                    # grid-invariant: cast once
    bpt = (k + n) * 4
    tl = _pick_seq_tile(seq, bpt, max(_TILE_BUDGET - wb.size * 2, 1 << 20))
    # TODO(synk): for very large K/N also tile K ('arbitrary') and N ('parallel')
    # with an f32 VMEM accumulator; at this model's D the weights fit VMEM.
    return pl.pallas_call(
        _linear_kernel,
        out_shape=jax.ShapeDtypeStruct((bsz, seq, n), jnp.float32),
        grid_spec=pltpu.PrefetchScalarGridSpec(
            num_scalar_prefetch=0,
            grid=(bsz, seq // tl),
            in_specs=[
                pl.BlockSpec((None, tl, k), lambda bi, li: (bi, li, 0)),
                pl.BlockSpec((k, n), lambda bi, li: (0, 0)),
                pl.BlockSpec((1, n), lambda bi, li: (0, 0)),
            ],
            out_specs=pl.BlockSpec((None, tl, n), lambda bi, li: (bi, li, 0)),
        ),
        compiler_params=pltpu.CompilerParams(
            dimension_semantics=("parallel", "parallel"),
            vmem_limit_bytes=_VMEM_LIMIT,
        ),
    )(x, wb, b.reshape(1, n))


def fused_encoder_layer_export(h, w1, b1, w2, b2):
    """Teacher / debug path: returns (fc2_output, h + fc2_output)."""
    bsz, seq, d = h.shape
    w1b, w2b = w1.astype(jnp.bfloat16), w2.astype(jnp.bfloat16)
    tl = _pick_seq_tile(seq, 5 * d * 4, max(_TILE_BUDGET - 4 * d * d, 1 << 20))
    x_spec, w_spec, b_spec = _layer_specs(d, tl)
    # TODO(synk): if production D < 128, present a lane-dense output slab
    # (e.g. view [M, D] as [M*D/128, 128]) to avoid masked vst.msk stores.
    f2, h_new = pl.pallas_call(
        _encoder_layer_export_kernel,
        out_shape=(jax.ShapeDtypeStruct((bsz, seq, d), jnp.float32),
                   jax.ShapeDtypeStruct((bsz, seq, d), jnp.float32)),
        grid_spec=pltpu.PrefetchScalarGridSpec(
            num_scalar_prefetch=0,
            grid=(bsz, seq // tl),
            in_specs=[x_spec, w_spec, b_spec, w_spec, b_spec],
            out_specs=[x_spec, x_spec],
        ),
        compiler_params=pltpu.CompilerParams(
            dimension_semantics=("parallel", "parallel"),
            vmem_limit_bytes=_VMEM_LIMIT,
        ),
    )(h, w1b, b1.reshape(1, d), w2b, b2.reshape(1, d))
    return f2, h_new


def fused_encoder_layer(h, w1, b1, w2, b2):
    """Unsupervised student layer: returns h + fc2_output only (no f2 HBM write)."""
    bsz, seq, d = h.shape
    w1b, w2b = w1.astype(jnp.bfloat16), w2.astype(jnp.bfloat16)
    tl = _pick_seq_tile(seq, 4 * d * 4, max(_TILE_BUDGET - 4 * d * d, 1 << 20))
    x_spec, w_spec, b_spec = _layer_specs(d, tl)
    return pl.pallas_call(
        _encoder_layer_plain_kernel,
        out_shape=jax.ShapeDtypeStruct((bsz, seq, d), jnp.float32),
        grid_spec=pltpu.PrefetchScalarGridSpec(
            num_scalar_prefetch=0,
            grid=(bsz, seq // tl),
            in_specs=[x_spec, w_spec, b_spec, w_spec, b_spec],
            out_specs=x_spec,
        ),
        compiler_params=pltpu.CompilerParams(
            dimension_semantics=("parallel", "parallel"),
            vmem_limit_bytes=_VMEM_LIMIT,
        ),
    )(h, w1b, b1.reshape(1, d), w2b, b2.reshape(1, d))


def fused_encoder_layer_kd(h, w1, b1, w2, b2, teacher_feature_pairs, att_mask_f):
    """Supervised student layer with the KD masked-MSE fused in.

    Returns (h_new, kd_numerator[B]) where kd_numerator[b] =
      sum_l mask[b,l] * sum_pairs (mean_d(t_in-x)^2 + mean_d(t_f2-f2)^2).
    """
    bsz, seq, d = h.shape
    n_pairs = len(teacher_feature_pairs)
    w1b, w2b = w1.astype(jnp.bfloat16), w2.astype(jnp.bfloat16)
    mask3 = att_mask_f.reshape(bsz, seq, 1)

    bpt = (4 + 2 * n_pairs) * d * 4 + 4
    tl = _pick_seq_tile(seq, bpt, max(_TILE_BUDGET - 4 * d * d, 1 << 20))
    x_spec, w_spec, b_spec = _layer_specs(d, tl)
    m_spec = pl.BlockSpec((None, tl, 1), lambda bi, li: (bi, li, 0))
    loss_spec = pl.BlockSpec((None, 1, 1), lambda bi, li: (bi, 0, 0))

    t_args = []
    for (t_in, t_f2) in teacher_feature_pairs:
        t_args += [t_in, t_f2]

    h_new, num = pl.pallas_call(
        _make_encoder_layer_kd_kernel(n_pairs),
        out_shape=(jax.ShapeDtypeStruct((bsz, seq, d), jnp.float32),
                   jax.ShapeDtypeStruct((bsz, 1, 1), jnp.float32)),
        grid_spec=pltpu.PrefetchScalarGridSpec(
            num_scalar_prefetch=0,
            grid=(bsz, seq // tl),
            in_specs=[x_spec, w_spec, b_spec, w_spec, b_spec]
                     + [x_spec] * (2 * n_pairs) + [m_spec],
            out_specs=[x_spec, loss_spec],
            scratch_shapes=[pltpu.VMEM((1, 1), jnp.float32)],
        ),
        compiler_params=pltpu.CompilerParams(
            # batch axis independent (shards across v7x's 2 TCs); sequence axis
            # carries the masked-MSE accumulator.
            dimension_semantics=("parallel", "arbitrary"),
            vmem_limit_bytes=_VMEM_LIMIT,
        ),
    )(h, w1b, b1.reshape(1, d), w2b, b2.reshape(1, d), *t_args, mask3)
    return h_new, num[:, 0, 0]


def qe_head(h, att_mask_f, w, b):
    """Masked mean-pool + Dout=1 projection, tiled over L with accumulators."""
    bsz, seq, d = h.shape
    tl = _pick_seq_tile(seq, bsz * (d + 1) * 4, _TILE_BUDGET)
    # TODO(synk): could be fused into the last encoder layer to avoid one full
    # re-read of h from HBM.
    out = pl.pallas_call(
        _qe_head_kernel,
        out_shape=jax.ShapeDtypeStruct((bsz, 1), jnp.float32),
        grid_spec=pltpu.PrefetchScalarGridSpec(
            num_scalar_prefetch=0,
            grid=(seq // tl,),
            in_specs=[
                pl.BlockSpec((bsz, tl, d), lambda li: (0, li, 0)),
                pl.BlockSpec((bsz, tl), lambda li: (0, li)),
                pl.BlockSpec((1, d), lambda li: (0, 0)),
                pl.BlockSpec((1, 1), lambda li: (0, 0)),
            ],
            out_specs=pl.BlockSpec((bsz, 1), lambda li: (0, 0)),
            scratch_shapes=[pltpu.VMEM((bsz, d), jnp.float32),
                            pltpu.VMEM((bsz, 1), jnp.float32)],
        ),
        compiler_params=pltpu.CompilerParams(
            dimension_semantics=("arbitrary",),
            vmem_limit_bytes=_VMEM_LIMIT,
        ),
    )(h, att_mask_f, w.reshape(1, d), b.reshape(1, 1))
    return out[:, 0]


# ----------------------------------------------------------------------------
# Synthetic teacher / student models (deterministic params, Pallas forward)
# ----------------------------------------------------------------------------
def init_model(key, d_model, n_layers):
    keys = jax.random.split(key, 3 + 2 * n_layers)
    params = {
        "emb": {
            "w": 0.1 * jax.random.normal(keys[0], (d_model, d_model), jnp.float32),
            "b": jnp.zeros((d_model,), jnp.float32),
        },
        "mlp": {
            "w": 0.1 * jax.random.normal(keys[1], (d_model, 1), jnp.float32),
            "b": jnp.zeros((1,), jnp.float32),
        },
        "layers": [],
    }
    for i in range(n_layers):
        params["layers"].append({
            "fc1_w": 0.1 * jax.random.normal(keys[2 + 2 * i], (d_model, d_model), jnp.float32),
            "fc1_b": jnp.zeros((d_model,), jnp.float32),
            "fc2_w": 0.1 * jax.random.normal(keys[3 + 2 * i], (d_model, d_model), jnp.float32),
            "fc2_b": jnp.zeros((d_model,), jnp.float32),
        })
    return params


def model_forward(params, x, att_mask):
    """Teacher / debug forward: exports per-layer 'input' and 'fc2_output'."""
    mask_f = att_mask.astype(jnp.float32)
    h = pallas_linear(x, params["emb"]["w"], params["emb"]["b"])     # embeddings
    encoder_outputs = []
    for lyr in params["layers"]:
        inp = h
        f2, h = fused_encoder_layer_export(h, lyr["fc1_w"], lyr["fc1_b"],
                                           lyr["fc2_w"], lyr["fc2_b"])
        encoder_outputs.append({"fc_outputs": {"input": inp, "fc2_output": f2},
                                "att_mask": att_mask})
    qe = qe_head(h, mask_f, params["mlp"]["w"], params["mlp"]["b"])  # [B]
    return {"qe_scores": qe, "encoder_outputs": encoder_outputs}


def student_forward_with_kd(params, teacher_out, encoder_sup_mapping, x, att_mask):
    """Student forward with the KD masked-MSE fused into supervised layers."""
    mask_f = att_mask.astype(jnp.float32)
    tgt_to_pairs = {}
    for src, tgt in encoder_sup_mapping.items():
        src, tgt = int(src), int(tgt)
        t_fc = teacher_out["encoder_outputs"][src]["fc_outputs"]
        tgt_to_pairs.setdefault(tgt, []).append((t_fc["input"], t_fc["fc2_output"]))

    h = pallas_linear(x, params["emb"]["w"], params["emb"]["b"])
    kd_num = jnp.zeros((x.shape[0],), jnp.float32)
    for i, lyr in enumerate(params["layers"]):
        if i in tgt_to_pairs:
            h, num = fused_encoder_layer_kd(
                h, lyr["fc1_w"], lyr["fc1_b"], lyr["fc2_w"], lyr["fc2_b"],
                tgt_to_pairs[i], mask_f)
            kd_num = kd_num + num
        else:
            h = fused_encoder_layer(h, lyr["fc1_w"], lyr["fc1_b"],
                                    lyr["fc2_w"], lyr["fc2_b"])
    s_qe = qe_head(h, mask_f, params["mlp"]["w"], params["mlp"]["b"])

    t_qe = teacher_out["qe_scores"].astype(jnp.float32)
    den = jnp.sum(mask_f, axis=-1)                      # [B] shared padding mask
    # NOTE: den==0 (fully masked example) gives NaN/Inf, matching the reference.
    per_example = (t_qe - s_qe) ** 2 + kd_num / den     # [B]
    return {"student_output": s_qe, "loss": jnp.mean(per_example)}


def kd_copy(teacher, student, encoder_copy_mapping):
    # KDModel.copy(): student embeddings + mlp <- teacher; optional encoder copies.
    student = dict(student)
    student["emb"] = jax.tree_util.tree_map(lambda a: a, teacher["emb"])
    student["mlp"] = jax.tree_util.tree_map(lambda a: a, teacher["mlp"])
    layers = list(student["layers"])
    for src, tgt in encoder_copy_mapping.items():
        layers[int(tgt)] = jax.tree_util.tree_map(lambda a: a, teacher["layers"][int(src)])
    student["layers"] = layers
    return student
    # TODO(synk): requires_grad freezing / train-eval mode toggles have no
    # runtime equivalent here (PyTorch autograd bookkeeping only).


def kd_forward(teacher_params, student_params, encoder_sup_mapping, x, att_mask):
    teacher_out = jax.lax.stop_gradient(model_forward(teacher_params, x, att_mask))
    return student_forward_with_kd(student_params, teacher_out,
                                   encoder_sup_mapping, x, att_mask)


# ----------------------------------------------------------------------------
# Pure-JAX reference for the loss (numerics check)
# ----------------------------------------------------------------------------
def kd_loss_ref(teacher_out, student_out, encoder_sup_mapping):
    loss = (teacher_out["qe_scores"] - student_out["qe_scores"]) ** 2  # [B]
    for src, tgt in encoder_sup_mapping.items():
        src, tgt = int(src), int(tgt)
        t_fc = teacher_out["encoder_outputs"][src]["fc_outputs"]
        s_fc = student_out["encoder_outputs"][tgt]["fc_outputs"]
        m = student_out["encoder_outputs"][tgt]["att_mask"]
        for n in ("input", "fc2_output"):
            per_tok = jnp.mean((t_fc[n] - s_fc[n]) ** 2, axis=-1)
            loss = loss + (per_tok * m).sum(-1) / m.sum(-1)
    return loss.mean()


# ----------------------------------------------------------------------------
if __name__ == "__main__":
    B, L, D, N_LAYERS = 2, 8, 32, 2
    key = jax.random.PRNGKey(0)
    k_t, k_s, k_x = jax.random.split(key, 3)

    teacher_params = init_model(k_t, D, N_LAYERS)
    student_params = init_model(k_s, D, N_LAYERS)

    encoder_sup_mapping = {0: 0, 1: 1}
    encoder_copy_mapping = {}  # default: only embeddings + mlp copied
    student_params = kd_copy(teacher_params, student_params, encoder_copy_mapping)

    x = jax.random.normal(k_x, (B, L, D), jnp.float32)
    lengths = jnp.array([L, L - 3])
    att_mask = (jnp.arange(L)[None, :] < lengths[:, None]).astype(jnp.float32)  # [B, L]

    out = kd_forward(teacher_params, student_params, encoder_sup_mapping, x, att_mask)
    jax.block_until_ready(out["loss"])

    # Numerics check: fused (in-layer) KD loss vs a pure-JAX reference computed
    # on the non-fused (export) path, which uses the identical matmul kernels.
    t_out = model_forward(teacher_params, x, att_mask)
    s_out = model_forward(student_params, x, att_mask)
    ref = kd_loss_ref(t_out, s_out, encoder_sup_mapping)
    assert jnp.allclose(out["loss"], ref, atol=1e-5, rtol=1e-5), (out["loss"], ref)
    assert jnp.allclose(out["student_output"], s_out["qe_scores"],
                        atol=1e-5, rtol=1e-5)
    assert out["student_output"].shape == (B,)

    print("KERNEL_OK")
</pallas_src>

<mosaic_0001>
module attributes {stable_mosaic.version = 11 : i64} {
  func.func @_linear_kernel(%arg0: i32, %arg1: i32, %arg2: memref<1x8x32xf32, #tpu.memory_space<vmem>>, %arg3: memref<32x32xbf16, #tpu.memory_space<vmem>>, %arg4: memref<1x32xf32, #tpu.memory_space<vmem>>, %arg5: memref<1x8x32xf32, #tpu.memory_space<vmem>>) attributes {dimension_semantics = [#tpu.dimension_semantics<parallel>, #tpu.dimension_semantics<parallel>], iteration_bounds = array<i64: 2, 1>, scalar_prefetch = 0 : i64, scratch_operands = 0 : i64, tpu.core_type = #tpu.core_type<tc>, window_params = [{transform_indices = @transform_0, window_bounds = array<i64: 1, 8, 32>}, {pipeline_mode = #tpu.pipeline_mode<synchronous>, transform_indices = @transform_1, window_bounds = array<i64: 32, 32>}, {pipeline_mode = #tpu.pipeline_mode<synchronous>, transform_indices = @transform_2, window_bounds = array<i64: 1, 32>}, {transform_indices = @transform_3, window_bounds = array<i64: 1, 8, 32>}]} {
    %c0 = arith.constant 0 : index
    %c0_0 = arith.constant 0 : index
    %c0_1 = arith.constant 0 : index
    %0 = vector.load %arg2[%c0, %c0_0, %c0_1] : memref<1x8x32xf32, #tpu.memory_space<vmem>>, vector<1x8x32xf32>
    %1 = vector.shape_cast %0 : vector<1x8x32xf32> to vector<8x32xf32>
    %2 = arith.truncf %1 : vector<8x32xf32> to vector<8x32xbf16>
    %c0_2 = arith.constant 0 : index
    %c0_3 = arith.constant 0 : index
    %3 = vector.load %arg3[%c0_2, %c0_3] : memref<32x32xbf16, #tpu.memory_space<vmem>>, vector<32x32xbf16>
    %cst = arith.constant dense<0.000000e+00> : vector<8x32xf32>
    %4 = tpu.matmul %2, %3, %cst {dimension_numbers = #tpu.dot_dimension_numbers<[1], [0], [0], [1], [0, 0, 1, 1], [], []>} : vector<8x32xbf16>, vector<32x32xbf16>, vector<8x32xf32> -> vector<8x32xf32>
    %c0_4 = arith.constant 0 : index
    %c0_5 = arith.constant 0 : index
    %5 = vector.load %arg4[%c0_4, %c0_5] : memref<1x32xf32, #tpu.memory_space<vmem>>, vector<1x32xf32>
    %6 = vector.broadcast %5 : vector<1x32xf32> to vector<8x32xf32>
    %7 = arith.addf %4, %6 : vector<8x32xf32>
    %c0_6 = arith.constant 0 : index
    %c0_7 = arith.constant 0 : index
    %c0_8 = arith.constant 0 : index
    %8 = vector.load %arg5[%c0_6, %c0_7, %c0_8] : memref<1x8x32xf32, #tpu.memory_space<vmem>>, vector<1x8x32xf32>
    %9 = vector.shape_cast %8 : vector<1x8x32xf32> to vector<8x32xf32>
    %10 = vector.shape_cast %7 : vector<8x32xf32> to vector<1x8x32xf32>
    tpu.vector_store %arg5[%c0_6, %c0_7, %c0_8], %10 {strides = array<i32>} : memref<1x8x32xf32, #tpu.memory_space<vmem>>, vector<1x8x32xf32>,
    return
  }
  func.func @transform_0(%arg0: i32, %arg1: i32) -> (i32, i32, i32) {
    %c0_i32 = arith.constant 0 : i32
    %c0_i32_0 = arith.constant 0 : i32
    return %arg0, %arg1, %c0_i32 : i32, i32, i32
  }
  func.func @transform_1(%arg0: i32, %arg1: i32) -> (i32, i32) {
    %c0_i32 = arith.constant 0 : i32
    %c0_i32_0 = arith.constant 0 : i32
    %c0_i32_1 = arith.constant 0 : i32
    return %c0_i32, %c0_i32_0 : i32, i32
  }
  func.func @transform_2(%arg0: i32, %arg1: i32) -> (i32, i32) {
    %c0_i32 = arith.constant 0 : i32
    %c0_i32_0 = arith.constant 0 : i32
    %c0_i32_1 = arith.constant 0 : i32
    return %c0_i32, %c0_i32_0 : i32, i32
  }
  func.func @transform_3(%arg0: i32, %arg1: i32) -> (i32, i32, i32) {
    %c0_i32 = arith.constant 0 : i32
    %c0_i32_0 = arith.constant 0 : i32
    return %arg0, %arg1, %c0_i32 : i32, i32, i32
  }
}

</mosaic_0001>

<bundles_post_ra>
// kernel: tpu_custom_call.1
= control target key start
LH: loop header
LB: loop body
LE: loop exit
PB: predicated region body
PF: predicated region fallthrough
CT: control target
= control target key end

     0   :  { %8 = vsyncpa [#allocation3], 0  ;;  %s789_s0 = inlined_call_operand.hbm [shape: f32[2,8,32], index: 0, kind: input, shape index: {}]   ;;  %s790_s1 = inlined_call_operand.hbm [shape: bf16[32,32], index: 1, kind: input, shape index: {}]   ;;  %s791_s2 = inlined_call_operand.vmem [shape: f32[1,32], index: 2, kind: input, shape index: {}]   ;;  %s792_s3 = inlined_call_operand.hbm [shape: f32[2,8,32], index: 3, kind: output, shape index: {}]  }
   0x1   :  { %10 = vsyncpa [#allocation3 + $0x1], 0 }
   0x2   :  { %11 = vsyncpa [#allocation6], 0 }
   0x3   :  { %12 = vsyncpa [#allocation4], 0 }
   0x4   :  { %14 = vsyncpa [#allocation4 + $0x1], 0  ;;  %s643_s12 = smov 0   ;;  %s645_s13 = smov 0  }
   0x5   :  { %s647_s14 = smov 0   ;;  %s649_s15 = smov 0  }
   0x6   :  { %s651_s16 = smov 0   ;;  %s653_s17 = smov 0  }
   0x7 LB: > { %s370_s18 = sadd.s32 4294967295, %s618_s17   ;;  %p372_p0 = scmp.ge.s32.totalorder %s618_s17, 1  ;;  %s618_s17 = sphi %s653_s17, %s20_s17   ;;  %s614_s16 = sphi %s651_s16, %s803_s16   ;;  %s610_s15 = sphi %s649_s15, %s802_s15   ;;  %s606_s14 = sphi %s647_s14, %s801_s14   ;;  %s602_s13 = sphi %s645_s13, %s800_s13   ;;  %s598_s12 = sphi %s643_s12, %s799_s12  }
   0x8   : > { %p675_p1 = scmp.eq.s32.totalorder %s370_s18, 0  ;;  %p135_p2 = scmp.lt.s32.totalorder %s618_s17, 3 }
   0x9   : > { %s146_s22 = sshll.u32 %s790_s1, 4  ;;  %s620_s24 = smov [#allocation5]   ;;  %s147_s22 = int_to_ptr.hbm [resolvable:$true] %s146_s22 }
   0xa   : > { %p683_p3 = pnand %p372_p0, %p135_p2  ;;  %s148_s25 = sshll.u32 %s620_s24, 4  ;;  %s149_s25 = int_to_ptr.vmem [resolvable:$true] %s148_s25 }
   0xb   : > { %p374_p6 = scmp.ge.s32.totalorder %s618_s17, 2  ;;  %s621_s26 = smov 64  }
   0xc   : > { %p404_p4 = pneg %p683_p3  ;;  %s622_s27 = smov 4  }
   0xd   : > { %s371_s28 = sadd.s32 4294967294, %s618_s17   ;;  %s32_s29 = sadd.s32 1, %s614_s16 }
   0xe   : > { %p405_p5 = pnand %p404_p4, %p675_p1  ;;  %s41_s30 = sadd.s32 1, %s606_s14 }
   0xf   : > { %p34_p7 = scmp.ge.s32.totalorder %s32_s29, 2  ;;  %p48_p8 = scmp.ne.s32.totalorder %s606_s14, %s602_s13 }
  0x10   : > { %407 = dma.hbm_to_vmem [thread:$0]  (!%p405_p5), %s147_s22, 256, %s149_s25, [#allocation6], %s621_s26, %s621_s26, %s622_s27  }
  0x11   : > { %p49_p9 = scmp.eq.s32.totalorder %s618_s17, 0  ;;  %p54_p10 = scmp.ne.s32.totalorder %s602_s13, %s598_s12 }
  0x12   : > { %s805_s29 = smov (%p34_p7, %s32_s29), 0  ;;  %p122_p13 = scmp.eq.s32.totalorder %s370_s18, 1 }
  0x13   : > { %p702_p11 = por %p49_p9, %p48_p8  ;;  %p708_p12 = por %p675_p1, %p54_p10 }
  0x14   : > { %s36_s6 = ssub.s32 %s614_s16, %s805_s29  ;;  %p128_p2 = scmp.eq.s32.totalorder %s371_s28, 1 }
  0x15   : > { %p39_p0 = scmp.eq.s32.totalorder %s36_s6, 0  ;;  %p714_p4 = por %p122_p13, %p48_p8 }
  0x16   : > { %p417_p5 = scmp.lt.s32.totalorder %s618_s17, 2  ;;  %p722_p7 = por %p128_p2, %p54_p10 }
  0x17   : > { %s720_s8 = scalar_select %p39_p0, %s606_s14, %s41_s30  }
  0x18   : > { %s165_s10 = sand.u32 1, %s606_s14   ;;  %s376_s20 = sshll.u32 %s614_s16, 3 }
  0x19   : > { %s375_s11 = sshll.u32 %s165_s10, 3  ;;  %s174_s18 = scalar_lea.hbm %s789_s0, %s376_s20 }
  0x1a   : > { %s169_s24 = scalar_lea.vmem [#allocation2], %s375_s11  ;;  %s176_s26 = sshll.u32 %s174_s18, 4  ;;  %s177_s26 = int_to_ptr.hbm [resolvable:$true] %s176_s26 }
  0x1b   : > { %s178_s25 = sshll.u32 %s169_s24, 4  ;;  %p409_p8 = pnand %p417_p5, %p702_p11  ;;  %s179_s25 = int_to_ptr.vmem [resolvable:$true] %s178_s25 }
  0x1c   : > { %s166_s27 = scalar_lea.sflag [#allocation3], %s165_s10  ;;  %187 = sbr.rel (%p683_p3) target bundleno = 178 (0xb2), region = 32 }
  0x1d   : > { %411 = dma.hbm_to_vmem [thread:$0]  (!%p409_p8), %s177_s26, 128, %s179_s25, %s166_s27  }
  0x1e   : > { %s736_s28 = sand.u32 (!%p683_p3), 1, %s602_s13  }
  0x1f   : > { %s378_s30 = sshll.u32 (!%p683_p3), %s736_s28, 3  ;;  %s190_s6 = scalar_lea.sflag (!%p683_p3), [#allocation3], %s736_s28 }
  0x20   : > { %s193_s11 = scalar_lea.vmem (!%p683_p3), [#allocation2], %s378_s30 }
  0x21   : > { %585 = dma.done.wait (%p708_p12), %s190_s6, 128  }
  0x22   : > { %587 = vsyncadd (%p708_p12), %s190_s6, 4294967168 }
  0x23   : > { %589 = dma.done.wait (%p675_p1), [#allocation6], 256  }
  0x24   : > { %591 = vsyncadd (%p675_p1), [#allocation6], 4294967040  ;;  %v395_v0 = vld [vmem:[#allocation5 + $0x8] sm:$0xff]  ;;  %v394_v1 = vld [vmem:[#allocation5] sm:$0xff]  ;;  %vm245_vm0 = vcmask 261120   ;;  %s391_s23 = sshll.u32 %s610_s15, 3 }
  0x25   : > { %255 = vmatpush.bf16.msra.mxu0 %v395_v0  ;;  %v223_v2 = vld [vmem:[%s193_s11] sm:$0xff]  ;;  %s275_s10 = scalar_lea.hbm %s792_s3, %s391_s23  ;;  %s221_s19 = scalar_lea.vmem [#allocation7], %s378_s30 }
  0x26   : > { %v224_v3 = vpack.c.bf16 %v223_v2, %v223_v2  ;;  %v471_v4 = vld [vmem:[%s791_s2] ss:$0 sm:$0xff]  ;;  %s277_s22 = sshll.u32 %s221_s19, 4  ;;  %s279_s18 = sshll.u32 %s275_s10, 4  ;;  %s278_s22 = int_to_ptr.vmem [resolvable:$true] %s277_s22  ;;  %s280_s18 = int_to_ptr.hbm [resolvable:$true] %s279_s18 }
  0x27   : > { %s264_s24 = scalar_lea.sflag [#allocation4], %s736_s28  ;;  %s546_s25 = sshra.s32 %s280_s18, 4  ;;  %s547_s25 = int_to_ptr.hbm [resolvable:$true] %s546_s25 }
  0x28   : > { %s548_s15 = scalar_lea.hbm %s547_s25, 8  ;;  %s552_s6 = scalar_lea.hbm %s792_s3, 16 }
  0x29   : > { %256 = vmatpush.bf16.msra.mxu0 %v394_v1  ;;  %p549_p1 = scmp.ne.s32.totalorder %s547_s25, %s548_s15  ;;  %p553_p10 = scmp.lt.s32.totalorder %s547_s25, %s792_s3 }
  0x2a   : > { %p554_p11 = scmp.lt.s32.totalorder %s552_s6, %s548_s15 }
  0x2b   : > { %p550_p3 = pnand %p549_p1, %p714_p4 }
  0x2c   : > { %389 = vmatmul.msk.bf16.vlgmr.msra.gmra.mxu0 %vm245_vm0, %v224_v3  ;;  %p555_p12 = por %p554_p11, %p553_p10 }
  0x2d   : > { %p551_p9 = pneg %p550_p3 }
  0x2f   : > { %p556_p13 = pnand %p555_p12, %p551_p9 }
  0xa9   : > { %v258_v5 = vpop.f32.mrf.mxu0 }
  0xaa   : > { %v259_v6 = vadd.f32 %v471_v4, %v258_v5 }
  0xac   : > { %262 = vst.msk [vmem:[%s221_s19] sm:$0xff] %vm245_vm0, %v259_v6 }
  0xad   : > { %559 = shalt.err (!%p556_p13)
}
  0xae   : > { %402 = dma.vmem_to_hbm [thread:$0]  (%p714_p4), %s278_s22, 128, %s280_s18, %s264_s24  }
  0xb1   : > { %v260_v7 = vpop.f32.mrf.mxu0 }
  0xb2 PF: > { %s291_s28 = sand.u32 1, %s598_s12   ;;  %p413_p0 = pnand %p374_p6, %p722_p7 }
  0xb3   : > { %s292_s23 = scalar_lea.sflag [#allocation4], %s291_s28 }
  0xb4   : > { %p414_p2 = pneg %p413_p0 }
  0xb6   : > { %593 = dma.done.wait (%p414_p2), %s292_s23, 128  }
  0xb7   : > { %595 = vsyncadd (%p414_p2), %s292_s23, 4294967168  ;;  %s20_s17 = sadd.s32 1, %s618_s17   ;;  %s799_s12 = smov %s602_s13 }
  0xb8   : > { %p17_p5 = scmp.ge.s32.totalorder %s20_s17, 4   ;;  %s800_s13 = smov %s606_s14 }
  0xb9   : > { %s801_s14 = smov %s720_s8  ;;  %s802_s15 = smov %s614_s16 }
  0xba   : > { %s803_s16 = smov %s805_s29  ;;  %19 = sbr.rel (!%p17_p5) target bundleno = 7 (0x7), region = 81 }
  0xbf   :  { %298 = vsyncpa [#allocation3], 1 }
  0xc0   :  { %300 = vsyncpa [#allocation3 + $0x1], 1 }
  0xc1   :  { %301 = vsyncpa [#allocation6], 1 }
  0xc2   :  { %302 = vsyncpa [#allocation4], 1 }
  0xc3   :  { %304 = vsyncpa [#allocation4 + $0x1], 1 }

</bundles_post_ra>
